<compile_context>
chip_gen: v7x
topology: tpu7x:2x2x1
jax: 0.10.0
libtpu: 0.0.40
codegen_flags: <defaults>
</compile_context>

<pallas_src>
import functools

import jax
import jax.numpy as jnp
from jax.experimental import pallas as pl
from jax.experimental.pallas import tpu as pltpu


def _rmsnorm_kernel(x_ref, w_ref, o_ref, *, eps):
    # x_ref: (tile_rows, D) input dtype, w_ref: (1, D) float32, o_ref like x.
    x = x_ref[...].astype(jnp.float32)
    w = w_ref[...]                                         # already float32
    means = jnp.mean(x * x, axis=-1, keepdims=True)        # (tile_rows, 1) XLU reduce
    inv = jax.lax.rsqrt(means + eps)                       # EUP rsqrt
    o_ref[...] = (x * inv * w).astype(o_ref.dtype)


def _round_up(x, m):
    return ((x + m - 1) // m) * m


def _default_tile_and_vmem():
    """Pick (row tile, scoped-VMEM budget) per TPU generation."""
    vmem_bytes = None
    try:
        vmem_bytes = pltpu.get_tpu_info().vmem_capacity_bytes
    except Exception:
        pass  # unknown chip / query unsupported -> conservative defaults
    if vmem_bytes is not None and vmem_bytes >= 96 * 1024 * 1024:
        # v5e / v6e: 128 MiB physical VMEM, the old 32 MiB cap was the binding
        # constraint. 4096 x 576 blocks: ~18 MiB double-buffered bf16 I/O plus
        # <=28 MiB of f32 temporaries -> comfortably under 64 MiB.
        return 4096, 64 * 1024 * 1024
    # v7x (64 MiB per TC) or unknown: bound the f32 working set by capping the
    # tile at 2048 (~9 MiB bf16 I/O + ~14 MiB f32 temps) under a 48 MiB limit.
    return 2048, 48 * 1024 * 1024


def rmsnorm(x, weight, *, eps=1e-5, tile_rows=None):
    """RMSNorm over the last dim of x (any leading dims), weight shape (D,)."""
    orig_shape = x.shape
    D = orig_shape[-1]
    rows = 1
    for s in orig_shape[:-1]:
        rows *= s
    x2d = x.reshape(rows, D)
    # Pre-cast weight to f32 in the wrapper (only D elements) so the per-tile
    # cast isn't re-materialized every grid step.
    w2d = weight.astype(jnp.float32).reshape(1, D)

    default_tile, vmem_limit = _default_tile_and_vmem()
    if tile_rows is None:
        tile_rows = default_tile

    if rows <= tile_rows:
        if rows >= 512:
            # Split into >= 2 blocks so both v7x TensorCores get work on the
            # "parallel" grid axis; round half-rows up to 16 (bf16 sublanes).
            tile = min(rows, _round_up(pl.cdiv(rows, 2), 16))
        else:
            tile = rows          # block == full array along rows: always legal
    else:
        tile = tile_rows         # multiple of 16 (bf16 sublane packing)

    grid = (pl.cdiv(rows, tile),)

    out2d = pl.pallas_call(
        functools.partial(_rmsnorm_kernel, eps=eps),
        out_shape=jax.ShapeDtypeStruct((rows, D), x.dtype),
        grid_spec=pltpu.PrefetchScalarGridSpec(
            num_scalar_prefetch=0,
            grid=grid,
            in_specs=[
                pl.BlockSpec((tile, D), lambda i: (i, 0)),
                pl.BlockSpec((1, D), lambda i: (0, 0)),
            ],
            out_specs=pl.BlockSpec((tile, D), lambda i: (i, 0)),
        ),
        compiler_params=pltpu.CompilerParams(
            dimension_semantics=("parallel",),
            vmem_limit_bytes=vmem_limit,
        ),
    )(x2d, w2d)

    return out2d.reshape(orig_shape)


def rmsnorm_ref(x, weight, eps=1e-5):
    xf = x.astype(jnp.float32)
    means = jnp.mean(xf * xf, axis=-1, keepdims=True)
    x_normed = xf * jax.lax.rsqrt(means + eps)
    return (x_normed * weight.astype(jnp.float32)).astype(x.dtype)


def _check(out, ref):
    assert out.shape == ref.shape and out.dtype == ref.dtype
    assert jnp.allclose(
        out.astype(jnp.float32), ref.astype(jnp.float32), atol=2e-2, rtol=2e-2
    ), "mismatch vs reference"


if __name__ == "__main__":
    # SmolLM2 config defaults: n_embd=576, norm_eps=1e-5, dtype=bfloat16.
    n_embd = 576
    eps = 1e-5

    key = jax.random.PRNGKey(0)
    k1, k2, k3, kw = jax.random.split(key, 4)

    # Test 1: small standard shape (batch=2, seq=8) -> single full-array tile.
    weight = jnp.ones((n_embd,), dtype=jnp.bfloat16)  # nn.Parameter(torch.ones)
    x = jax.random.normal(k1, (2, 8, n_embd), dtype=jnp.float32).astype(jnp.bfloat16)
    out = jax.block_until_ready(rmsnorm(x, weight, eps=eps))
    _check(out, rmsnorm_ref(x, weight, eps=eps))

    # Test 2: ragged multi-tile path (rows=18 with tile_rows=8) and a
    # non-trivial (learned-like) weight to exercise the scale multiply.
    weight2 = (
        1.0 + 0.1 * jax.random.normal(kw, (n_embd,), dtype=jnp.float32)
    ).astype(jnp.bfloat16)
    x2 = jax.random.normal(k2, (2, 9, n_embd), dtype=jnp.float32).astype(jnp.bfloat16)
    out2 = jax.block_until_ready(rmsnorm(x2, weight2, eps=eps, tile_rows=8))
    _check(out2, rmsnorm_ref(x2, weight2, eps=eps))

    # Test 3: medium row count (rows=600) to exercise the >=2-block
    # (megacore) split + clipped ragged last block on the default code path.
    x3 = jax.random.normal(k3, (1, 600, n_embd), dtype=jnp.float32).astype(jnp.bfloat16)
    out3 = jax.block_until_ready(rmsnorm(x3, weight2, eps=eps))
    _check(out3, rmsnorm_ref(x3, weight2, eps=eps))

    print("KERNEL_OK")
</pallas_src>

<mosaic_0001>
module attributes {stable_mosaic.version = 11 : i64} {
  func.func @_rmsnorm_kernel(%arg0: i32, %arg1: memref<16x576xbf16, #tpu.memory_space<vmem>>, %arg2: memref<1x576xf32, #tpu.memory_space<vmem>>, %arg3: memref<16x576xbf16, #tpu.memory_space<vmem>>) attributes {dimension_semantics = [#tpu.dimension_semantics<parallel>], iteration_bounds = array<i64: 1>, scalar_prefetch = 0 : i64, scratch_operands = 0 : i64, tpu.core_type = #tpu.core_type<tc>, window_params = [{transform_indices = @transform_0, window_bounds = array<i64: 16, 576>}, {pipeline_mode = #tpu.pipeline_mode<synchronous>, transform_indices = @transform_1, window_bounds = array<i64: 1, 576>}, {transform_indices = @transform_2, window_bounds = array<i64: 16, 576>}]} {
    %c0 = arith.constant 0 : index
    %c0_0 = arith.constant 0 : index
    %0 = vector.load %arg1[%c0, %c0_0] : memref<16x576xbf16, #tpu.memory_space<vmem>>, vector<16x576xbf16>
    %1 = arith.extf %0 : vector<16x576xbf16> to vector<16x576xf32>
    %c0_1 = arith.constant 0 : index
    %c0_2 = arith.constant 0 : index
    %2 = vector.load %arg2[%c0_1, %c0_2] : memref<1x576xf32, #tpu.memory_space<vmem>>, vector<1x576xf32>
    %3 = arith.mulf %1, %1 : vector<16x576xf32>
    %cst = arith.constant dense<0.000000e+00> : vector<16xf32>
    %4 = vector.multi_reduction <add>, %3, %cst [1] : vector<16x576xf32> to vector<16xf32>
    %5 = vector.shape_cast %4 : vector<16xf32> to vector<16x1xf32>
    %cst_3 = arith.constant 5.760000e+02 : f32
    %6 = vector.broadcast %cst_3 : f32 to vector<16x1xf32>
    %7 = arith.divf %5, %6 : vector<16x1xf32>
    %cst_4 = arith.constant 9.99999974E-6 : f32
    %8 = vector.broadcast %cst_4 : f32 to vector<16x1xf32>
    %9 = arith.addf %7, %8 : vector<16x1xf32>
    %10 = math.rsqrt %9 : vector<16x1xf32>
    %11 = vector.broadcast %10 : vector<16x1xf32> to vector<16x576xf32>
    %12 = arith.mulf %1, %11 : vector<16x576xf32>
    %13 = vector.broadcast %2 : vector<1x576xf32> to vector<16x576xf32>
    %14 = arith.mulf %12, %13 : vector<16x576xf32>
    %15 = arith.truncf %14 : vector<16x576xf32> to vector<16x576xbf16>
    %c0_5 = arith.constant 0 : index
    %c0_6 = arith.constant 0 : index
    %16 = vector.load %arg3[%c0_5, %c0_6] : memref<16x576xbf16, #tpu.memory_space<vmem>>, vector<16x576xbf16>
    tpu.vector_store %arg3[%c0_5, %c0_6], %15 {strides = array<i32>} : memref<16x576xbf16, #tpu.memory_space<vmem>>, vector<16x576xbf16>,
    return
  }
  func.func @transform_0(%arg0: i32) -> (i32, i32) {
    %c0_i32 = arith.constant 0 : i32
    %c0_i32_0 = arith.constant 0 : i32
    return %arg0, %c0_i32 : i32, i32
  }
  func.func @transform_1(%arg0: i32) -> (i32, i32) {
    %c0_i32 = arith.constant 0 : i32
    %c0_i32_0 = arith.constant 0 : i32
    %c0_i32_1 = arith.constant 0 : i32
    return %c0_i32, %c0_i32_0 : i32, i32
  }
  func.func @transform_2(%arg0: i32) -> (i32, i32) {
    %c0_i32 = arith.constant 0 : i32
    %c0_i32_0 = arith.constant 0 : i32
    return %arg0, %c0_i32 : i32, i32
  }
}

</mosaic_0001>

<bundles_post_ra>
// kernel: tpu_custom_call.1
= control target key start
LH: loop header
LB: loop body
LE: loop exit
PB: predicated region body
PF: predicated region fallthrough
CT: control target
= control target key end

     0   :  { %7 = vsyncpa [#allocation3], 0  ;;  %s349_s0 = inlined_call_operand.hbm [shape: bf16[16,576], index: 0, kind: input, shape index: {}]   ;;  %s350_s1 = inlined_call_operand.hbm [shape: f32[1,576], index: 1, kind: input, shape index: {}]   ;;  %s351_s2 = inlined_call_operand.hbm [shape: bf16[16,576], index: 2, kind: output, shape index: {}]  }
   0x1   :  { %8 = vsyncpa [#allocation6], 0 }
   0x2   :  { %9 = vsyncpa [#allocation4], 0  ;;  %s283_s9 = smov [#allocation2]   ;;  %s211_s13 = scalar_lea.hbm %s349_s0, 640 }
   0x3   :  { %s15_s10 = sshll.u32 %s283_s9, 4  ;;  %p212_p0 = scmp.ne.s32.totalorder %s349_s0, %s211_s13  ;;  %s16_s10 = int_to_ptr.vmem [resolvable:$true] %s15_s10 }
   0x4   :  { %p215_p1 = scmp.lt.u32.totalorder %s211_s13, %s349_s0 }
   0x6   :  { %p217_p2 = pnand %p215_p1, %p212_p0 }
   0x8   :  { %220 = shalt.err (!%p217_p2)
}
   0x9   :  { %s221_s18 = scalar_lea.vmem %s16_s10, 640  ;;  %p226_p4 = scmp.lt.s32.totalorder %s16_s10, %s16_s10 }
   0xa   :  { %p222_p3 = scmp.ne.s32.totalorder %s16_s10, %s221_s18  ;;  %p227_p5 = scmp.lt.s32.totalorder %s221_s18, %s221_s18 }
   0xc   :  { %p228_p6 = por %p227_p5, %p226_p4 }
   0xe   :  { %p229_p7 = pnand %p228_p6, %p222_p3 }
  0x10   :  { %232 = shalt.err (!%p229_p7)
}
  0x11   :  { %s284_s19 = smov 320   ;;  %s285_s20 = smov 20  }
  0x12   :  { %21 = dma.hbm_to_vmem [thread:$0]  %s349_s0, 640, %s16_s10, [#allocation3], %s284_s19, %s284_s19, %s285_s20  }
  0x13   :  { %s286_s23 = smov [#allocation5]   ;;  %s233_s27 = scalar_lea.hbm %s350_s1, 80 }
  0x14   :  { %s28_s24 = sshll.u32 %s286_s23, 4  ;;  %p234_p8 = scmp.ne.s32.totalorder %s350_s1, %s233_s27  ;;  %s29_s24 = int_to_ptr.vmem [resolvable:$true] %s28_s24 }
  0x15   :  { %p237_p9 = scmp.lt.u32.totalorder %s233_s27, %s350_s1 }
  0x17   :  { %p239_p10 = pnand %p237_p9, %p234_p8 }
  0x19   :  { %242 = shalt.err (!%p239_p10)
}
  0x1a   :  { %s243_s4 = scalar_lea.vmem %s29_s24, 80  ;;  %s247_s0 = scalar_lea.vmem %s29_s24, 96 }
  0x1b   :  { %p244_p11 = scmp.ne.s32.totalorder %s29_s24, %s243_s4  ;;  %p248_p12 = scmp.lt.s32.totalorder %s29_s24, %s29_s24 }
  0x1c   :  { %p249_p13 = scmp.lt.s32.totalorder %s247_s0, %s243_s4 }
  0x1e   :  { %p250_p0 = por %p249_p13, %p248_p12 }
  0x20   :  { %p251_p1 = pnand %p250_p0, %p244_p11 }
  0x22   :  { %254 = shalt.err (!%p251_p1)
}
  0x23   :  { %31 = dma.hbm_to_vmem [thread:$0]  %s350_s1, 80, %s29_s24, [#allocation6]  }
  0x24   :  { %277 = dma.done.wait [#allocation3], 640  }
  0x25   :  { %278 = vsyncadd [#allocation3], 4294966656 }
  0x26   :  { %279 = dma.done.wait [#allocation6], 80  }
  0x27   :  { %280 = vsyncadd [#allocation6], 4294967216  ;;  %v38_v0 = vld [vmem:[#allocation2] sm:$0xff]  ;;  %v39_v1 = vld [vmem:[#allocation2 + $0x8] sm:$0xff]  ;;  %vm68_vm0 = vcmask 523264   ;;  %v98_v37 = vlaneseq  ;;  %vm167_vm1 = vcmask 519168  }
  0x28   :  { %v40_v2 = vld [vmem:[#allocation2 + $0x10] ss:$20 sps:$4 sm:$0xff]   ;;  %v44_v3 = vunpack.c.l.bf16 %v38_v0  ;;  %v45_v4 = vunpack.c.h.bf16 %v38_v0  ;;  %v46_v5 = vunpack.c.l.bf16 %v39_v1  ;;  %v47_v6 = vunpack.c.h.bf16 %v39_v1  ;;  %v41_v7 = vld [vmem:[#allocation2 + $0x14] sm:$0xff]  ;;  %v42_v8 = vld [vmem:[#allocation2 + $0x1c] sm:$0xff]  ;;  %s287_s1 = smov [#allocation7]  }
  0x29   :  { %v48_v9 = vunpack.c.l.bf16 %v40_v2  ;;  %v49_v10 = vunpack.c.l.bf16 %v41_v7  ;;  %v50_v11 = vunpack.c.h.bf16 %v41_v7  ;;  %v51_v12 = vunpack.c.l.bf16 %v42_v8  ;;  %v54_v47 = vld [vmem:[#allocation5] sm:$0x1f]  ;;  %s177_s7 = sshll.u32 %s287_s1, 4  ;;  %s178_s7 = int_to_ptr.vmem [resolvable:$true] %s177_s7 }
  0x2a   :  { %v55_v13 = vmul.f32 %v44_v3, %v44_v3  ;;  %v56_v14 = vmul.f32 %v45_v4, %v45_v4  ;;  %v57_v15 = vmul.f32 %v46_v5, %v46_v5  ;;  %v52_v17 = vunpack.c.h.bf16 %v42_v8  ;;  %s255_s8 = scalar_lea.vmem %s178_s7, 640  ;;  %p260_p3 = scmp.lt.s32.totalorder %s178_s7, %s178_s7 }
  0x2b   :  { %v59_v16 = vmul.f32 %v48_v9, %v48_v9  ;;  %v53_v18 = vunpack.c.h.bf16 %v40_v2  ;;  %v60_v19 = vmul.f32 %v49_v10, %v49_v10  ;;  %v58_v20 = vmul.f32 %v47_v6, %v47_v6  ;;  %p256_p2 = scmp.ne.s32.totalorder %s178_s7, %s255_s8  ;;  %p261_p4 = scmp.lt.s32.totalorder %s255_s8, %s255_s8 }
  0x2c   :  { %v65_v21 = vadd.f32 %v56_v14, %v55_v13  ;;  %v61_v22 = vmul.f32 %v50_v11, %v50_v11  ;;  %v62_v23 = vmul.f32 %v51_v12, %v51_v12  ;;  %v63_v26 = vmul.f32 %v52_v17, %v52_v17 }
  0x2d   :  { %v64_v24 = vmul.f32 %v53_v18, %v53_v18  ;;  %v69_v28 = vsel %vm68_vm0, %v59_v16, 0.0  ;;  %v99_v41 = vshrl.u32 %v98_v37, 7  ;;  %p262_p5 = por %p261_p4, %p260_p3 }
  0x2e   :  { %v66_v25 = vadd.f32 %v65_v21, %v57_v15  ;;  %v73_v27 = vadd.f32 %v61_v22, %v60_v19 }
  0x2f   :  { %v76_v31 = vsel %vm68_vm0, %v64_v24, 0.0  ;;  %v100_v43 = vsub.s32 0, %v99_v41  ;;  %v104_v44 = vsub.s32 1, %v99_v41  ;;  %v108_v45 = vsub.s32 2, %v99_v41  ;;  %p263_p6 = pnand %p262_p5, %p256_p2 }
  0x30   :  { %v67_v29 = vadd.f32 %v66_v25, %v58_v20  ;;  %v74_v30 = vadd.f32 %v73_v27, %v62_v23  ;;  %v112_v46 = vsub.s32 3, %v99_v41  ;;  %v116_v48 = vsub.s32 4, %v99_v41 }
  0x31   :  { %v101_v49 = vrot.slane %v54_v47, %v100_v43  ;;  %v105_v50 = vrot.slane %v54_v47, %v104_v44  ;;  %v109_v51 = vrot.slane %v54_v47, %v108_v45 }
  0x32   :  { %v70_v32 = vadd.f32 %v69_v28, %v67_v29  ;;  %v75_v33 = vadd.f32 %v74_v30, %v63_v26  ;;  %v113_v52 = vrot.slane %v54_v47, %v112_v46  ;;  %v117_v54 = vrot.slane %v54_v47, %v116_v48 }
  0x34   :  { %71 = vadd.xlane.f32.xlu0 %v70_v32  ;;  %v77_v34 = vadd.f32 %v76_v31, %v75_v33 }
  0x38   :  { %78 = vadd.xlane.f32.xlu0 %v77_v34 }
  0xc1   :  { %v72_v35 = vpop.xlane.xlu0 %71 }
  0xc2   :  { %v81_v36 = vmul.f32 0.0017361111, %v72_v35 }
  0xc4   :  { %v83_v38 = vadd.f32 1e-05, %v81_v36 }
  0xc5   :  { %v79_v39 = vpop.xlane.xlu0 %78 }
  0xc6   :  { %207 = vrsqrt.f32 %v83_v38  ;;  %v82_v40 = vmul.f32 0.0017361111, %v79_v39 }
  0xc8   :  { %v84_v42 = vadd.f32 1e-05, %v82_v40 }
  0xca   :  { %209 = vrsqrt.f32 %v84_v42 }
  0xd0   :  { %v208_v53 = vpop.eup %207 }
  0xd1   :  { %v87_v55 = vmul.f32 %v208_v53, %v44_v3  ;;  %v88_v56 = vmul.f32 %v208_v53, %v45_v4  ;;  %v89_v57 = vmul.f32 %v208_v53, %v46_v5  ;;  %v90_v58 = vmul.f32 %v208_v53, %v47_v6 }
  0xd2   :  { %v91_v59 = vmul.f32 %v208_v53, %v48_v9 }
  0xd3   :  { %v123_v60 = vmul.f32 %v101_v49, %v87_v55  ;;  %v124_v61 = vmul.f32 %v105_v50, %v88_v56  ;;  %v125_v62 = vmul.f32 %v109_v51, %v89_v57  ;;  %v126_v63 = vmul.f32 %v113_v52, %v90_v58 }
  0xd4   :  { %v210_v0 = vpop.eup %209  ;;  %v127_v1 = vmul.f32 %v117_v54, %v91_v59 }
  0xd5   :  { %v92_v2 = vmul.f32 %v210_v0, %v49_v10  ;;  %v93_v7 = vmul.f32 %v210_v0, %v50_v11  ;;  %v94_v8 = vmul.f32 %v210_v0, %v51_v12  ;;  %v95_v13 = vmul.f32 %v210_v0, %v52_v17 }
  0xd6   :  { %v96_v14 = vmul.f32 %v210_v0, %v53_v18  ;;  %v196_v15 = vpack.c.bf16 %v124_v61, %v123_v60  ;;  %v197_v16 = vpack.c.bf16 %v126_v63, %v125_v62  ;;  %v198_v19 = vpack.c.bf16 %v127_v1, %v127_v1 }
  0xd7   :  { %v128_v3 = vmul.f32 %v101_v49, %v92_v2  ;;  %v129_v4 = vmul.f32 %v105_v50, %v93_v7  ;;  %v130_v5 = vmul.f32 %v109_v51, %v94_v8  ;;  %v131_v6 = vmul.f32 %v113_v52, %v95_v13 }
  0xd8   :  { %v132_v9 = vmul.f32 %v117_v54, %v96_v14  ;;  %165 = vst [vmem:[#allocation7] sm:$0xff] %v196_v15  ;;  %166 = vst [vmem:[#allocation7 + $0x8] sm:$0xff] %v197_v16 }
  0xd9   :  { %168 = vst.msk [vmem:[#allocation7 + $0x10] sm:$0xf] %vm167_vm1, %v198_v19  ;;  %v199_v20 = vpack.c.bf16 %v129_v4, %v128_v3  ;;  %v200_v10 = vpack.c.bf16 %v131_v6, %v130_v5 }
  0xda   :  { %v201_v11 = vpack.c.bf16 %v132_v9, %v132_v9 }
  0xdb   :  { %169 = vst [vmem:[#allocation7 + $0x14] sm:$0xff] %v199_v20  ;;  %170 = vst [vmem:[#allocation7 + $0x1c] sm:$0xff] %v200_v10 }
  0xdc   :  { %171 = vst.msk [vmem:[#allocation7 + $0x24] sm:$0xf] %vm167_vm1, %v201_v11 }
  0xdd   :  { %266 = shalt.err (!%p263_p6)
}
  0xde   :  { %s267_s11 = scalar_lea.hbm %s351_s2, 640 }
  0xdf   :  { %p268_p7 = scmp.ne.s32.totalorder %s351_s2, %s267_s11  ;;  %p271_p8 = scmp.lt.u32.totalorder %s267_s11, %s351_s2 }
  0xe1   :  { %p273_p9 = pnand %p271_p8, %p268_p7 }
  0xe3   :  { %276 = shalt.err (!%p273_p9)
}
  0xe4   :  { %183 = dma.vmem_to_hbm [thread:$0]  %s178_s7, 640, %s351_s2, [#allocation4], %s284_s19, %s284_s19, %s285_s20  }
  0xe5   :  { %281 = dma.done.wait [#allocation4], 640  }
  0xe6   :  { %282 = vsyncadd [#allocation4], 4294966656 }
  0xe7   :  { %187 = vsyncpa [#allocation3], 1 }
  0xe8   :  { %188 = vsyncpa [#allocation6], 1 }
  0xe9   :  { %189 = vsyncpa [#allocation4], 1 }

</bundles_post_ra>
